<compile_context>
chip_gen: v6e
topology: v6e:2x2x1
jax: 0.10.0
libtpu: 0.0.40
codegen_flags: <defaults>
</compile_context>

<pallas_src>
import functools

import jax
import jax.numpy as jnp
from jax import lax
from jax.experimental import pallas as pl
from jax.experimental.pallas import tpu as pltpu

# fixed soft_label constants from the module's default
S0, S1, S2, S3 = 0.0, 0.7, 0.9, 1.0

_LANE = 128
_CHUNK_ELEMS = 8192   # target elements per inner compute chunk


def _round_up(x, m):
    return ((x + m - 1) // m) * m


def _hw_config():
    """Heuristic (num_parallel_cores, per-input block bytes, vmem limit bytes)."""
    kind = ""
    try:
        kind = jax.devices()[0].device_kind.lower()
    except Exception:
        pass
    if "v7" in kind:
        # v7x: 2 TensorCores, only 64 MiB VMEM per TC -> keep blocks modest.
        # TODO(synk): verify the leading "parallel" axis really shards across the
        # two v7x TensorCores (xprof); switch to pltpu.CORE_PARALLEL / pl.core_map
        # if it does not.
        return 2, 4 * 1024 * 1024, 32 * 1024 * 1024
    if "v5" in kind or "v6" in kind:
        # single TensorCore, 128 MiB VMEM: bigger blocks amortize pipeline steps
        return 1, 8 * 1024 * 1024, 64 * 1024 * 1024
    # unknown / interpret: conservative defaults
    return 1, 4 * 1024 * 1024, 32 * 1024 * 1024


def _loss_block(x, t):
    """| sum_k prod_{j!=k}(t - s_j) * log(1 + s_k - sigmoid(x)) |, elementwise."""
    x = x.astype(jnp.float32)
    t = t.astype(jnp.float32)
    # p = sigmoid(x).  Shared, numerically stable pieces (5 EUP ops/element):
    #   em = exp(-|x|);  u = em (x>=0) else 1;  1 - p = u / (1 + em)
    #   log(1 + s_k - p) = log(u + s_k*(1 + em)) - log(1 + em)
    #   log(1 - p)       = -relu(x) - log(1 + em)
    em = jnp.exp(-jnp.abs(x))
    one_p_em = 1.0 + em
    log_den = jnp.log(one_p_em)
    u = jnp.where(x >= 0.0, em, 1.0)

    d0 = t - S0
    d1 = t - S1
    d2 = t - S2
    d3 = t - S3
    d01 = d0 * d1
    d23 = d2 * d3

    # consume each log term immediately into the running loss (bounds liveness)
    loss = (d1 * d23) * (-jnp.maximum(x, 0.0) - log_den)               # k = 0
    loss = loss + (d0 * d23) * (jnp.log(u + S1 * one_p_em) - log_den)  # k = 1
    loss = loss + (d01 * d3) * (jnp.log(u + S2 * one_p_em) - log_den)  # k = 2
    loss = loss + (d01 * d2) * (jnp.log(u + S3 * one_p_em) - log_den)  # k = 3
    return jnp.abs(loss)


def _mce_kernel(prob_ref, target_ref, out_ref, acc_ref, *,
                total_valid, lanes, rows_per_block, chunk_rows, tiles_per_core):
    p_idx = pl.program_id(0)          # per-core "parallel" axis
    t_idx = pl.program_id(1)          # reduction axis
    n_inner = pl.num_programs(1)
    n_chunks = rows_per_block // chunk_rows

    @pl.when(t_idx == 0)
    def _():
        acc_ref[...] = jnp.zeros_like(acc_ref)

    block_elems = rows_per_block * lanes
    block_elem0 = (p_idx * tiles_per_core + t_idx) * block_elems

    # Fast path: block contains only valid elements -> no mask, no iota.
    @pl.when(block_elem0 + block_elems <= total_valid)
    def _():
        @pl.loop(0, n_chunks)
        def _(c):
            r0 = pl.multiple_of(c * chunk_rows, chunk_rows)
            acc_ref[...] += _loss_block(prob_ref[pl.ds(r0, chunk_rows), :],
                                        target_ref[pl.ds(r0, chunk_rows), :])

    # Boundary block (at most one per core): mask by flat element index.
    @pl.when((block_elem0 < total_valid)
             & (block_elem0 + block_elems > total_valid))
    def _():
        # iota hoisted out of the chunk loop (broadcast_in_dim is not CSE'd)
        chunk_iota = (
            lax.broadcasted_iota(jnp.int32, (chunk_rows, lanes), 0) * lanes
            + lax.broadcasted_iota(jnp.int32, (chunk_rows, lanes), 1))

        @pl.loop(0, n_chunks)
        def _(c):
            r0 = pl.multiple_of(c * chunk_rows, chunk_rows)
            loss = _loss_block(prob_ref[pl.ds(r0, chunk_rows), :],
                               target_ref[pl.ds(r0, chunk_rows), :])
            flat = block_elem0 + r0 * lanes + chunk_iota
            # select (not multiply): padded garbage may be NaN/Inf
            acc_ref[...] += jnp.where(flat < total_valid, loss, 0.0)

    @pl.when(t_idx == n_inner - 1)
    def _():
        # single cross-lane reduce per core, written once to SMEM output
        out_ref[0, 0] = jnp.sum(acc_ref[...])


def mutil_cross_entropy_loss(prob, target):
    """Pallas TPU implementation of MutilCrossEntropyLoss.forward (default soft_label)."""
    assert prob.shape == target.shape
    total_numel = int(prob.size)
    assert total_numel > 0
    num_parallel, target_block_bytes, vmem_limit = _hw_config()

    last = prob.shape[-1] if prob.ndim >= 1 else 1
    if prob.ndim >= 2 and last % _LANE == 0 and last <= 512:
        # Last dim already lane-dense; collapsing leading dims is layout-free.
        lanes = last
        prob2 = prob.reshape(-1, lanes)
        target2 = target.reshape(-1, lanes)
    else:
        # Flatten fully and present a lane-dense (rows, L) view.
        flat_p = prob.reshape(-1)
        flat_t = target.reshape(-1)
        padded = _round_up(total_numel, _LANE)
        if padded != total_numel:
            # TODO(synk): small unavoidable pad-copy when numel % 128 != 0.
            flat_p = jnp.pad(flat_p, (0, padded - total_numel))
            flat_t = jnp.pad(flat_t, (0, padded - total_numel))
        lanes = next(l for l in (512, 256, 128) if padded % l == 0)
        prob2 = flat_p.reshape(-1, lanes)
        target2 = flat_t.reshape(-1, lanes)

    rows_total = prob2.shape[0]

    # inner compute chunk: ~_CHUNK_ELEMS elements, sublane-multiple-of-16 rows
    chunk_rows = max(16, (_CHUNK_ELEMS // lanes) // 16 * 16)
    if rows_total <= chunk_rows:
        # single block equal to the full row extent (always legal)
        chunk_rows = rows_total
        rows_per_block = rows_total
    else:
        itemsize = max(prob2.dtype.itemsize, target2.dtype.itemsize)
        budget_rows = max(chunk_rows,
                          (target_block_bytes // (lanes * itemsize))
                          // chunk_rows * chunk_rows)
        rows_in_bounds = (rows_total // chunk_rows) * chunk_rows
        rows_per_block = max(chunk_rows, min(budget_rows, rows_in_bounds))

    tiles_total = pl.cdiv(rows_total, rows_per_block)
    num_parallel = max(1, min(num_parallel, tiles_total))
    tiles_per_core = pl.cdiv(tiles_total, num_parallel)

    kernel = functools.partial(
        _mce_kernel,
        total_valid=total_numel,
        lanes=lanes,
        rows_per_block=rows_per_block,
        chunk_rows=chunk_rows,
        tiles_per_core=tiles_per_core,
    )

    def in_map(p, t):
        # clamp so blocks past the end (uneven core split) re-read the last
        # block (compute for them is skipped in-kernel)
        return (jnp.minimum(p * tiles_per_core + t, tiles_total - 1), 0)

    in_spec = pl.BlockSpec((rows_per_block, lanes), in_map)

    partials = pl.pallas_call(
        kernel,
        out_shape=jax.ShapeDtypeStruct((num_parallel, 1), jnp.float32),
        grid_spec=pltpu.PrefetchScalarGridSpec(
            num_scalar_prefetch=0,
            grid=(num_parallel, tiles_per_core),
            in_specs=[in_spec, in_spec],
            out_specs=pl.BlockSpec((1, 1), lambda p, t: (p, 0),
                                   memory_space=pltpu.SMEM),
            scratch_shapes=[pltpu.VMEM((chunk_rows, lanes), jnp.float32)],
        ),
        compiler_params=pltpu.CompilerParams(
            dimension_semantics=("parallel", "arbitrary"),
            vmem_limit_bytes=vmem_limit,
        ),
    )(prob2, target2)

    # tiny finish: sum per-core partials, mean over ORIGINAL numel
    return jnp.sum(partials) / jnp.float32(total_numel)


def _reference(prob, target):
    p = jax.nn.sigmoid(prob)
    t = target
    loss = ((t - S1) * (t - S2) * (t - S3) * jnp.log(1.0 + S0 - p)
            + (t - S0) * (t - S2) * (t - S3) * jnp.log(1.0 + S1 - p)
            + (t - S0) * (t - S1) * (t - S3) * jnp.log(1.0 + S2 - p)
            + (t - S0) * (t - S1) * (t - S2) * jnp.log(1.0 + S3 - p))
    return jnp.sum(jnp.abs(loss)) / loss.size


if __name__ == "__main__":
    key = jax.random.PRNGKey(0)

    # (batch, classes) cases: lane-dense, ragged/masked, and multi-block paths
    shapes = [(16, 128), (7, 96), (300, 257)]
    for i, (B, N) in enumerate(shapes):
        k1, k2 = jax.random.split(jax.random.fold_in(key, i))
        prob = jax.random.normal(k1, (B, N), dtype=jnp.float32)     # raw logits
        target = jax.random.uniform(k2, (B, N), dtype=jnp.float32)  # soft labels

        out = jax.block_until_ready(mutil_cross_entropy_loss(prob, target))
        ref = jax.block_until_ready(_reference(prob, target))
        assert jnp.allclose(out, ref, rtol=1e-4, atol=1e-6), (B, N, out, ref)

    print("KERNEL_OK")
</pallas_src>

<mosaic_0001>
module attributes {stable_mosaic.version = 11 : i64} {
  func.func @_mce_kernel(%arg0: i32, %arg1: i32, %arg2: memref<16x128xf32, #tpu.memory_space<vmem>>, %arg3: memref<16x128xf32, #tpu.memory_space<vmem>>, %arg4: memref<1x1xf32, #tpu.memory_space<smem>>, %arg5: memref<16x128xf32, #tpu.memory_space<vmem>>) attributes {dimension_semantics = [#tpu.dimension_semantics<parallel>, #tpu.dimension_semantics<arbitrary>], iteration_bounds = array<i64: 1, 1>, scalar_prefetch = 0 : i64, scratch_operands = 1 : i64, tpu.core_type = #tpu.core_type<tc>, window_params = [{transform_indices = @transform_0, window_bounds = array<i64: 16, 128>}, {transform_indices = @transform_1, window_bounds = array<i64: 16, 128>}, {transform_indices = @transform_2, window_bounds = array<i64: 1, 1>}]} {
    %c0_i32 = arith.constant 0 : i32
    %0 = arith.cmpi eq, %arg1, %c0_i32 : i32
    %1 = arith.extui %0 : i1 to i32
    %c0_i32_0 = arith.constant 0 : i32
    %2 = arith.cmpi ne, %1, %c0_i32_0 : i32
    scf.if %2 {
      %cst = arith.constant 0.000000e+00 : f32
      %19 = vector.broadcast %cst : f32 to vector<16x128xf32>
      %c0 = arith.constant 0 : index
      %c0_10 = arith.constant 0 : index
      %20 = vector.load %arg5[%c0, %c0_10] : memref<16x128xf32, #tpu.memory_space<vmem>>, vector<16x128xf32>
      tpu.vector_store %arg5[%c0, %c0_10], %19 {strides = array<i32>} : memref<16x128xf32, #tpu.memory_space<vmem>>, vector<16x128xf32>,
    } else {
    }
    %c1_i32 = arith.constant 1 : i32
    %3 = arith.muli %arg0, %c1_i32 : i32
    %4 = arith.addi %3, %arg1 : i32
    %c2048_i32 = arith.constant 2048 : i32
    %5 = arith.muli %4, %c2048_i32 : i32
    %c2048_i32_1 = arith.constant 2048 : i32
    %6 = arith.addi %5, %c2048_i32_1 : i32
    %c2048_i32_2 = arith.constant 2048 : i32
    %7 = arith.cmpi sle, %6, %c2048_i32_2 : i32
    %8 = arith.extui %7 : i1 to i32
    %c0_i32_3 = arith.constant 0 : i32
    %9 = arith.cmpi ne, %8, %c0_i32_3 : i32
    scf.if %9 {
      %c0_i32_10 = arith.constant 0 : i32
      %c1_i32_11 = arith.constant 1 : i32
      %19 = arith.muli %c0_i32_10, %c1_i32_11 : i32
      %c0_i32_12 = arith.constant 0 : i32
      %20 = arith.addi %c0_i32_12, %19 : i32
      %c16_i32 = arith.constant 16 : i32
      %21 = arith.muli %20, %c16_i32 : i32
      %22 = tpu.assume_multiple %21, 16 : i32
      %c0 = arith.constant 0 : index
      %c0_13 = arith.constant 0 : index
      %23 = vector.load %arg5[%c0, %c0_13] : memref<16x128xf32, #tpu.memory_space<vmem>>, vector<16x128xf32>
      %24 = arith.index_cast %22 : i32 to index
      %c0_14 = arith.constant 0 : index
      %25 = vector.load %arg2[%24, %c0_14] : memref<16x128xf32, #tpu.memory_space<vmem>>, vector<16x128xf32>
      %26 = arith.index_cast %22 : i32 to index
      %c0_15 = arith.constant 0 : index
      %27 = vector.load %arg3[%26, %c0_15] : memref<16x128xf32, #tpu.memory_space<vmem>>, vector<16x128xf32>
      %28 = math.absf %25 : vector<16x128xf32>
      %cst = arith.constant 0.000000e+00 : f32
      %29 = vector.broadcast %cst : f32 to vector<16x128xf32>
      %30 = arith.subf %29, %28 : vector<16x128xf32>
      %31 = math.exp %30 : vector<16x128xf32>
      %cst_16 = arith.constant 1.000000e+00 : f32
      %32 = vector.broadcast %cst_16 : f32 to vector<16x128xf32>
      %33 = arith.addf %32, %31 : vector<16x128xf32>
      %34 = math.log %33 : vector<16x128xf32>
      %cst_17 = arith.constant 0.000000e+00 : f32
      %35 = vector.broadcast %cst_17 : f32 to vector<16x128xf32>
      %36 = arith.cmpf oge, %25, %35 : vector<16x128xf32>
      %cst_18 = arith.constant 1.000000e+00 : f32
      %37 = vector.broadcast %cst_18 : f32 to vector<16x128xf32>
      %38 = arith.select %36, %31, %37 : vector<16x128xi1>, vector<16x128xf32>
      %cst_19 = arith.constant 0.000000e+00 : f32
      %39 = vector.broadcast %cst_19 : f32 to vector<16x128xf32>
      %40 = arith.subf %27, %39 : vector<16x128xf32>
      %cst_20 = arith.constant 0.699999988 : f32
      %41 = vector.broadcast %cst_20 : f32 to vector<16x128xf32>
      %42 = arith.subf %27, %41 : vector<16x128xf32>
      %cst_21 = arith.constant 0.899999976 : f32
      %43 = vector.broadcast %cst_21 : f32 to vector<16x128xf32>
      %44 = arith.subf %27, %43 : vector<16x128xf32>
      %cst_22 = arith.constant 1.000000e+00 : f32
      %45 = vector.broadcast %cst_22 : f32 to vector<16x128xf32>
      %46 = arith.subf %27, %45 : vector<16x128xf32>
      %47 = arith.mulf %40, %42 : vector<16x128xf32>
      %48 = arith.mulf %44, %46 : vector<16x128xf32>
      %49 = arith.mulf %42, %48 : vector<16x128xf32>
      %cst_23 = arith.constant 0.000000e+00 : f32
      %50 = vector.broadcast %cst_23 : f32 to vector<16x128xf32>
      %51 = arith.maximumf %25, %50 : vector<16x128xf32>
      %cst_24 = arith.constant 0.000000e+00 : f32
      %52 = vector.broadcast %cst_24 : f32 to vector<16x128xf32>
      %53 = arith.subf %52, %51 : vector<16x128xf32>
      %54 = arith.subf %53, %34 : vector<16x128xf32>
      %55 = arith.mulf %49, %54 : vector<16x128xf32>
      %56 = arith.mulf %40, %48 : vector<16x128xf32>
      %cst_25 = arith.constant 0.699999988 : f32
      %57 = vector.broadcast %cst_25 : f32 to vector<16x128xf32>
      %58 = arith.mulf %57, %33 : vector<16x128xf32>
      %59 = arith.addf %38, %58 : vector<16x128xf32>
      %60 = math.log %59 : vector<16x128xf32>
      %61 = arith.subf %60, %34 : vector<16x128xf32>
      %62 = arith.mulf %56, %61 : vector<16x128xf32>
      %63 = arith.addf %55, %62 : vector<16x128xf32>
      %64 = arith.mulf %47, %46 : vector<16x128xf32>
      %cst_26 = arith.constant 0.899999976 : f32
      %65 = vector.broadcast %cst_26 : f32 to vector<16x128xf32>
      %66 = arith.mulf %65, %33 : vector<16x128xf32>
      %67 = arith.addf %38, %66 : vector<16x128xf32>
      %68 = math.log %67 : vector<16x128xf32>
      %69 = arith.subf %68, %34 : vector<16x128xf32>
      %70 = arith.mulf %64, %69 : vector<16x128xf32>
      %71 = arith.addf %63, %70 : vector<16x128xf32>
      %72 = arith.mulf %47, %44 : vector<16x128xf32>
      %cst_27 = arith.constant 1.000000e+00 : f32
      %73 = vector.broadcast %cst_27 : f32 to vector<16x128xf32>
      %74 = arith.mulf %73, %33 : vector<16x128xf32>
      %75 = arith.addf %38, %74 : vector<16x128xf32>
      %76 = math.log %75 : vector<16x128xf32>
      %77 = arith.subf %76, %34 : vector<16x128xf32>
      %78 = arith.mulf %72, %77 : vector<16x128xf32>
      %79 = arith.addf %71, %78 : vector<16x128xf32>
      %80 = math.absf %79 : vector<16x128xf32>
      %81 = arith.addf %23, %80 : vector<16x128xf32>
      %c0_28 = arith.constant 0 : index
      %c0_29 = arith.constant 0 : index
      %82 = vector.load %arg5[%c0_28, %c0_29] : memref<16x128xf32, #tpu.memory_space<vmem>>, vector<16x128xf32>
      tpu.vector_store %arg5[%c0_28, %c0_29], %81 {strides = array<i32>} : memref<16x128xf32, #tpu.memory_space<vmem>>, vector<16x128xf32>,
      %c1_i32_30 = arith.constant 1 : i32
    } else {
    }
    %c2048_i32_4 = arith.constant 2048 : i32
    %10 = arith.cmpi slt, %5, %c2048_i32_4 : i32
    %c2048_i32_5 = arith.constant 2048 : i32
    %11 = arith.addi %5, %c2048_i32_5 : i32
    %c2048_i32_6 = arith.constant 2048 : i32
    %12 = arith.cmpi sgt, %11, %c2048_i32_6 : i32
    %13 = arith.andi %10, %12 : i1
    %14 = arith.extui %13 : i1 to i32
    %c0_i32_7 = arith.constant 0 : i32
    %15 = arith.cmpi ne, %14, %c0_i32_7 : i32
    scf.if %15 {
      %19 = tpu.iota {dimensions = array<i32: 0>} : vector<16x128xi32>
      %c128_i32 = arith.constant 128 : i32
      %20 = vector.broadcast %c128_i32 : i32 to vector<16x128xi32>
      %21 = arith.muli %19, %20 : vector<16x128xi32>
      %22 = tpu.iota {dimensions = array<i32: 1>} : vector<16x128xi32>
      %23 = arith.addi %21, %22 : vector<16x128xi32>
      %c0_i32_10 = arith.constant 0 : i32
      %c1_i32_11 = arith.constant 1 : i32
      %24 = arith.muli %c0_i32_10, %c1_i32_11 : i32
      %c0_i32_12 = arith.constant 0 : i32
      %25 = arith.addi %c0_i32_12, %24 : i32
      %c16_i32 = arith.constant 16 : i32
      %26 = arith.muli %25, %c16_i32 : i32
      %27 = tpu.assume_multiple %26, 16 : i32
      %28 = arith.index_cast %27 : i32 to index
      %c0 = arith.constant 0 : index
      %29 = vector.load %arg2[%28, %c0] : memref<16x128xf32, #tpu.memory_space<vmem>>, vector<16x128xf32>
      %30 = arith.index_cast %27 : i32 to index
      %c0_13 = arith.constant 0 : index
      %31 = vector.load %arg3[%30, %c0_13] : memref<16x128xf32, #tpu.memory_space<vmem>>, vector<16x128xf32>
      %32 = math.absf %29 : vector<16x128xf32>
      %cst = arith.constant 0.000000e+00 : f32
      %33 = vector.broadcast %cst : f32 to vector<16x128xf32>
      %34 = arith.subf %33, %32 : vector<16x128xf32>
      %35 = math.exp %34 : vector<16x128xf32>
      %cst_14 = arith.constant 1.000000e+00 : f32
      %36 = vector.broadcast %cst_14 : f32 to vector<16x128xf32>
      %37 = arith.addf %36, %35 : vector<16x128xf32>
      %38 = math.log %37 : vector<16x128xf32>
      %cst_15 = arith.constant 0.000000e+00 : f32
      %39 = vector.broadcast %cst_15 : f32 to vector<16x128xf32>
      %40 = arith.cmpf oge, %29, %39 : vector<16x128xf32>
      %cst_16 = arith.constant 1.000000e+00 : f32
      %41 = vector.broadcast %cst_16 : f32 to vector<16x128xf32>
      %42 = arith.select %40, %35, %41 : vector<16x128xi1>, vector<16x128xf32>
      %cst_17 = arith.constant 0.000000e+00 : f32
      %43 = vector.broadcast %cst_17 : f32 to vector<16x128xf32>
      %44 = arith.subf %31, %43 : vector<16x128xf32>
      %cst_18 = arith.constant 0.699999988 : f32
      %45 = vector.broadcast %cst_18 : f32 to vector<16x128xf32>
      %46 = arith.subf %31, %45 : vector<16x128xf32>
      %cst_19 = arith.constant 0.899999976 : f32
      %47 = vector.broadcast %cst_19 : f32 to vector<16x128xf32>
      %48 = arith.subf %31, %47 : vector<16x128xf32>
      %cst_20 = arith.constant 1.000000e+00 : f32
      %49 = vector.broadcast %cst_20 : f32 to vector<16x128xf32>
      %50 = arith.subf %31, %49 : vector<16x128xf32>
      %51 = arith.mulf %44, %46 : vector<16x128xf32>
      %52 = arith.mulf %48, %50 : vector<16x128xf32>
      %53 = arith.mulf %46, %52 : vector<16x128xf32>
      %cst_21 = arith.constant 0.000000e+00 : f32
      %54 = vector.broadcast %cst_21 : f32 to vector<16x128xf32>
      %55 = arith.maximumf %29, %54 : vector<16x128xf32>
      %cst_22 = arith.constant 0.000000e+00 : f32
      %56 = vector.broadcast %cst_22 : f32 to vector<16x128xf32>
      %57 = arith.subf %56, %55 : vector<16x128xf32>
      %58 = arith.subf %57, %38 : vector<16x128xf32>
      %59 = arith.mulf %53, %58 : vector<16x128xf32>
      %60 = arith.mulf %44, %52 : vector<16x128xf32>
      %cst_23 = arith.constant 0.699999988 : f32
      %61 = vector.broadcast %cst_23 : f32 to vector<16x128xf32>
      %62 = arith.mulf %61, %37 : vector<16x128xf32>
      %63 = arith.addf %42, %62 : vector<16x128xf32>
      %64 = math.log %63 : vector<16x128xf32>
      %65 = arith.subf %64, %38 : vector<16x128xf32>
      %66 = arith.mulf %60, %65 : vector<16x128xf32>
      %67 = arith.addf %59, %66 : vector<16x128xf32>
      %68 = arith.mulf %51, %50 : vector<16x128xf32>
      %cst_24 = arith.constant 0.899999976 : f32
      %69 = vector.broadcast %cst_24 : f32 to vector<16x128xf32>
      %70 = arith.mulf %69, %37 : vector<16x128xf32>
      %71 = arith.addf %42, %70 : vector<16x128xf32>
      %72 = math.log %71 : vector<16x128xf32>
      %73 = arith.subf %72, %38 : vector<16x128xf32>
      %74 = arith.mulf %68, %73 : vector<16x128xf32>
      %75 = arith.addf %67, %74 : vector<16x128xf32>
      %76 = arith.mulf %51, %48 : vector<16x128xf32>
      %cst_25 = arith.constant 1.000000e+00 : f32
      %77 = vector.broadcast %cst_25 : f32 to vector<16x128xf32>
      %78 = arith.mulf %77, %37 : vector<16x128xf32>
      %79 = arith.addf %42, %78 : vector<16x128xf32>
      %80 = math.log %79 : vector<16x128xf32>
      %81 = arith.subf %80, %38 : vector<16x128xf32>
      %82 = arith.mulf %76, %81 : vector<16x128xf32>
      %83 = arith.addf %75, %82 : vector<16x128xf32>
      %84 = math.absf %83 : vector<16x128xf32>
      %c128_i32_26 = arith.constant 128 : i32
      %85 = arith.muli %27, %c128_i32_26 : i32
      %86 = arith.addi %5, %85 : i32
      %87 = vector.broadcast %86 : i32 to vector<16x128xi32>
      %88 = arith.addi %87, %23 : vector<16x128xi32>
      %c0_27 = arith.constant 0 : index
      %c0_28 = arith.constant 0 : index
      %89 = vector.load %arg5[%c0_27, %c0_28] : memref<16x128xf32, #tpu.memory_space<vmem>>, vector<16x128xf32>
      %c2048_i32_29 = arith.constant 2048 : i32
      %90 = vector.broadcast %c2048_i32_29 : i32 to vector<16x128xi32>
      %91 = arith.cmpi slt, %88, %90 : vector<16x128xi32>
      %cst_30 = arith.constant 0.000000e+00 : f32
      %92 = vector.broadcast %cst_30 : f32 to vector<16x128xf32>
      %93 = arith.select %91, %84, %92 : vector<16x128xi1>, vector<16x128xf32>
      %94 = arith.addf %89, %93 : vector<16x128xf32>
      %c0_31 = arith.constant 0 : index
      %c0_32 = arith.constant 0 : index
      %95 = vector.load %arg5[%c0_31, %c0_32] : memref<16x128xf32, #tpu.memory_space<vmem>>, vector<16x128xf32>
      tpu.vector_store %arg5[%c0_31, %c0_32], %94 {strides = array<i32>} : memref<16x128xf32, #tpu.memory_space<vmem>>, vector<16x128xf32>,
      %c1_i32_33 = arith.constant 1 : i32
    } else {
    }
    %c0_i32_8 = arith.constant 0 : i32
    %16 = arith.cmpi eq, %arg1, %c0_i32_8 : i32
    %17 = arith.extui %16 : i1 to i32
    %c0_i32_9 = arith.constant 0 : i32
    %18 = arith.cmpi ne, %17, %c0_i32_9 : i32
    scf.if %18 {
      %c0 = arith.constant 0 : index
      %c0_10 = arith.constant 0 : index
      %19 = vector.load %arg5[%c0, %c0_10] : memref<16x128xf32, #tpu.memory_space<vmem>>, vector<16x128xf32>
      %20 = vector.shape_cast %19 : vector<16x128xf32> to vector<1x16x128xf32>
      %cst = arith.constant dense<0.000000e+00> : vector<1xf32>
      %21 = vector.multi_reduction <add>, %20, %cst [1, 2] : vector<1x16x128xf32> to vector<1xf32>
      %22 = vector.shape_cast %21 : vector<1xf32> to vector<1x1x1xf32>
      %23 = vector.extract %22[0, 0, 0] : f32 from vector<1x1x1xf32>
      %c0_11 = arith.constant 0 : index
      %c0_12 = arith.constant 0 : index
      %24 = memref.load %arg4[%c0_11, %c0_12] : memref<1x1xf32, #tpu.memory_space<smem>>
      memref.store %23, %arg4[%c0_11, %c0_12] : memref<1x1xf32, #tpu.memory_space<smem>>
    } else {
    }
    return
  }
  func.func @transform_0(%arg0: i32, %arg1: i32) -> (i32, i32) {
    %c1_i32 = arith.constant 1 : i32
    %0 = arith.muli %arg0, %c1_i32 : i32
    %1 = arith.addi %0, %arg1 : i32
    %c0_i32 = arith.constant 0 : i32
    %2 = arith.minsi %1, %c0_i32 : i32
    %c0_i32_0 = arith.constant 0 : i32
    %c0_i32_1 = arith.constant 0 : i32
    return %2, %c0_i32_0 : i32, i32
  }
  func.func @transform_1(%arg0: i32, %arg1: i32) -> (i32, i32) {
    %c1_i32 = arith.constant 1 : i32
    %0 = arith.muli %arg0, %c1_i32 : i32
    %1 = arith.addi %0, %arg1 : i32
    %c0_i32 = arith.constant 0 : i32
    %2 = arith.minsi %1, %c0_i32 : i32
    %c0_i32_0 = arith.constant 0 : i32
    %c0_i32_1 = arith.constant 0 : i32
    return %2, %c0_i32_0 : i32, i32
  }
  func.func @transform_2(%arg0: i32, %arg1: i32) -> (i32, i32) {
    %c0_i32 = arith.constant 0 : i32
    %c0_i32_0 = arith.constant 0 : i32
    return %arg0, %c0_i32 : i32, i32
  }
}

</mosaic_0001>

<bundles_post_ra>
// kernel: tpu_custom_call.1
= control target key start
LH: loop header
LB: loop body
LE: loop exit
PB: predicated region body
PF: predicated region fallthrough
CT: control target
= control target key end

     0   :  { %7 = vsyncpa [#allocation4], 0  ;;  %s447_s0 = inlined_call_operand.hbm [shape: f32[16,128], index: 0, kind: input, shape index: {}]   ;;  %s448_s1 = inlined_call_operand.hbm [shape: f32[16,128], index: 1, kind: input, shape index: {}]   ;;  %s449_s2 = inlined_call_operand.hbm [shape: f32[1,1], index: 2, kind: output, shape index: {}]  }
   0x1   :  { %8 = vsyncpa [#allocation7], 0 }
   0x2   :  { %9 = vsyncpa [#allocation5], 0  ;;  %s418_s9 = smov [#allocation3]  }
   0x3   :  { %s21_s10 = sshll.u32 %s418_s9, 4  ;;  %s22_s10 = int_to_ptr.vmem [resolvable:$true] %s21_s10 }
   0x4   :  { %s372_s11 = scalar_lea.vmem %s22_s10, 256  ;;  %p377_p1 = scmp.lt.s32.totalorder %s22_s10, %s22_s10 }
   0x5   :  { %p373_p0 = scmp.ne.s32.totalorder %s22_s10, %s372_s11  ;;  %p378_p2 = scmp.lt.s32.totalorder %s372_s11, %s372_s11 }
   0x7   :  { %p379_p3 = por %p378_p2, %p377_p1 }
   0x9   :  { %p380_p4 = pnand %p379_p3, %p373_p0 }
   0xb   :  { %383 = shalt.err (!%p380_p4)
}
   0xc   :  { %s419_s12 = smov 128   ;;  %s420_s13 = smov 8  }
   0xd   :  { %27 = dma.hbm_to_vmem [thread:$0]  %s447_s0, 256, %s22_s10, [#allocation4], %s419_s12, %s419_s12, %s420_s13  }
   0xe   :  { %s421_s16 = smov [#allocation6]  }
   0xf   :  { %s39_s17 = sshll.u32 %s421_s16, 4  ;;  %s40_s17 = int_to_ptr.vmem [resolvable:$true] %s39_s17 }
  0x10   :  { %s392_s18 = scalar_lea.vmem %s40_s17, 256  ;;  %p397_p6 = scmp.lt.s32.totalorder %s40_s17, %s40_s17 }
  0x11   :  { %p393_p5 = scmp.ne.s32.totalorder %s40_s17, %s392_s18  ;;  %p398_p7 = scmp.lt.s32.totalorder %s392_s18, %s392_s18 }
  0x13   :  { %p399_p8 = por %p398_p7, %p397_p6 }
  0x15   :  { %p400_p9 = pnand %p399_p8, %p393_p5 }
  0x17   :  { %403 = shalt.err (!%p400_p9)
}
  0x18   :  { %45 = dma.hbm_to_vmem [thread:$0]  %s448_s1, 256, %s40_s17, [#allocation7], %s419_s12, %s419_s12, %s420_s13  }
  0x19   :  { %412 = dma.done.wait [#allocation4], 256  }
  0x1a   :  { %413 = vsyncadd [#allocation4], 4294967040 }
  0x1b   :  { %414 = dma.done.wait [#allocation7], 256  }
  0x1c   :  { %415 = vsyncadd [#allocation7], 4294967040  ;;  %v75_v0 = vld [vmem:[#allocation3] sm:$0xff]  ;;  %v76_v1 = vld [vmem:[#allocation3 + $0x8] sm:$0xff]  ;;  %s422_s1 = smov [#allocation8]  }
  0x1d   :  { %v79_v2 = vand.u32 2147483647, %v75_v0  ;;  %v80_v3 = vand.u32 2147483647, %v76_v1  ;;  %vm93_vm0 = vcmp.ge.f32.partialorder %v75_v0, 0.0  ;;  %vm94_vm1 = vcmp.ge.f32.partialorder %v76_v1, 0.0 }
  0x1e   :  { %v77_v24 = vld [vmem:[#allocation6] sm:$0xff]  ;;  %v78_v25 = vld [vmem:[#allocation6 + $0x8] sm:$0xff]  ;;  %v109_v28 = vmax.f32 %v75_v0, 0.0  ;;  %v110_v31 = vmax.f32 %v76_v1, 0.0 }
  0x1f   :  { %v81_v4 = vsub.f32 0.0, %v79_v2  ;;  %v82_v5 = vsub.f32 0.0, %v80_v3  ;;  %v327_v26 = vadd.f32 -0.9, %v77_v24  ;;  %v329_v27 = vadd.f32 -1.0, %v77_v24 }
  0x20   :  { %v328_v29 = vadd.f32 -0.9, %v78_v25  ;;  %v330_v30 = vadd.f32 -1.0, %v78_v25  ;;  %v325_v32 = vadd.f32 -0.7, %v77_v24  ;;  %v111_v35 = vsub.f32 0.0, %v109_v28 }
  0x21   :  { %v83_v6 = vmul.f32 1.442695, %v81_v4  ;;  %v85_v7 = vmul.f32 1.442695, %v82_v5  ;;  %v326_v33 = vadd.f32 -0.7, %v78_v25  ;;  %v105_v34 = vmul.f32 %v329_v27, %v327_v26 }
  0x22   :  { %v106_v37 = vmul.f32 %v330_v30, %v328_v29  ;;  %v112_v38 = vsub.f32 0.0, %v110_v31  ;;  %v103_v41 = vmul.f32 %v325_v32, %v77_v24 }
  0x23   :  { %344 = vpow2.f32 %v83_v6  ;;  %v104_v42 = vmul.f32 %v326_v33, %v78_v25  ;;  %v107_v46 = vmul.f32 %v325_v32, %v105_v34  ;;  %v117_v54 = vmul.f32 %v105_v34, %v77_v24 }
  0x24   :  { %346 = vpow2.f32 %v85_v7  ;;  %v108_v50 = vmul.f32 %v326_v33, %v106_v37  ;;  %v133_v56 = vmul.f32 %v329_v27, %v103_v41  ;;  %v118_v59 = vmul.f32 %v106_v37, %v78_v25 }
  0x25   :  { %v134_v57 = vmul.f32 %v330_v30, %v104_v42  ;;  %v149_v61 = vmul.f32 %v327_v26, %v103_v41  ;;  %v150_v62 = vmul.f32 %v328_v29, %v104_v42 }
  0x30   :  { %v345_v8 = vpop.eup %344 }
  0x31   :  { %v347_v9 = vpop.eup %346  ;;  %v87_v10 = vadd.f32 1.0, %v345_v8  ;;  %v95_v12 = vsel %vm93_vm0, %v345_v8, 1.0 }
  0x32   :  { %v88_v11 = vadd.f32 1.0, %v347_v9  ;;  %v96_v13 = vsel %vm94_vm1, %v347_v9, 1.0 }
  0x33   :  { %348 = vlog2.f32 %v87_v10  ;;  %v119_v14 = vmul.f32 0.7, %v87_v10  ;;  %v135_v15 = vmul.f32 0.9, %v87_v10  ;;  %v151_v16 = vadd.f32 %v95_v12, %v87_v10 }
  0x34   :  { %350 = vlog2.f32 %v88_v11  ;;  %v120_v17 = vmul.f32 0.7, %v88_v11  ;;  %v136_v18 = vmul.f32 0.9, %v88_v11  ;;  %v152_v19 = vadd.f32 %v96_v13, %v88_v11 }
  0x35   :  { %v121_v20 = vadd.f32 %v119_v14, %v95_v12  ;;  %v137_v21 = vadd.f32 %v135_v15, %v95_v12  ;;  %352 = vlog2.f32 %v151_v16 }
  0x36   :  { %v122_v22 = vadd.f32 %v120_v17, %v96_v13  ;;  %v138_v23 = vadd.f32 %v136_v18, %v96_v13  ;;  %354 = vlog2.f32 %v152_v19 }
  0x37   :  { %356 = vlog2.f32 %v121_v20 }
  0x38   :  { %358 = vlog2.f32 %v122_v22 }
  0x39   :  { %360 = vlog2.f32 %v137_v21 }
  0x3a   :  { %362 = vlog2.f32 %v138_v23 }
  0x40   :  { %v349_v36 = vpop.eup %348 }
  0x41   :  { %v351_v39 = vpop.eup %350  ;;  %v90_v40 = vmul.f32 0.6931472, %v349_v36 }
  0x42   :  { %v353_v43 = vpop.eup %352  ;;  %v92_v44 = vmul.f32 0.6931472, %v351_v39 }
  0x43   :  { %v355_v45 = vpop.eup %354  ;;  %v113_v47 = vsub.f32 %v111_v35, %v90_v40  ;;  %v154_v48 = vmul.f32 0.6931472, %v353_v43 }
  0x44   :  { %v357_v49 = vpop.eup %356  ;;  %v114_v51 = vsub.f32 %v112_v38, %v92_v44  ;;  %v156_v52 = vmul.f32 0.6931472, %v355_v45 }
  0x45   :  { %v359_v53 = vpop.eup %358  ;;  %v124_v55 = vmul.f32 0.6931472, %v357_v49  ;;  %v115_v0 = vmul.f32 %v113_v47, %v107_v46  ;;  %v157_v3 = vsub.f32 %v154_v48, %v90_v40 }
  0x46   :  { %v361_v58 = vpop.eup %360  ;;  %v126_v60 = vmul.f32 0.6931472, %v359_v53  ;;  %v116_v4 = vmul.f32 %v114_v51, %v108_v50  ;;  %v158_v7 = vsub.f32 %v156_v52, %v92_v44 }
  0x47   :  { %v363_v63 = vpop.eup %362  ;;  %v127_v1 = vsub.f32 %v124_v55, %v90_v40  ;;  %v140_v2 = vmul.f32 0.6931472, %v361_v58  ;;  %v159_v14 = vmul.f32 %v157_v3, %v149_v61 }
  0x48   :  { %v128_v5 = vsub.f32 %v126_v60, %v92_v44  ;;  %v142_v6 = vmul.f32 0.6931472, %v363_v63  ;;  %v160_v17 = vmul.f32 %v158_v7, %v150_v62 }
  0x49   :  { %v129_v8 = vmul.f32 %v127_v1, %v117_v54  ;;  %v143_v9 = vsub.f32 %v140_v2, %v90_v40 }
  0x4a   :  { %v130_v10 = vmul.f32 %v128_v5, %v118_v59  ;;  %v144_v11 = vsub.f32 %v142_v6, %v92_v44 }
  0x4b   :  { %v131_v12 = vadd.f32 %v129_v8, %v115_v0  ;;  %v145_v13 = vmul.f32 %v143_v9, %v133_v56 }
  0x4c   :  { %v132_v15 = vadd.f32 %v130_v10, %v116_v4  ;;  %v146_v16 = vmul.f32 %v144_v11, %v134_v57 }
  0x4d   :  { %v147_v18 = vadd.f32 %v145_v13, %v131_v12 }
  0x4e   :  { %v148_v19 = vadd.f32 %v146_v16, %v132_v15 }
  0x4f   :  { %v161_v20 = vadd.f32 %v159_v14, %v147_v18 }
  0x50   :  { %v162_v21 = vadd.f32 %v160_v17, %v148_v19 }
  0x51   :  { %v163_v22 = vand.u32 2147483647, %v161_v20 }
  0x52   :  { %v164_v23 = vand.u32 2147483647, %v162_v21 }
  0x54   :  { %v294_v24 = vadd.f32 %v164_v23, %v163_v22 }
  0x56   :  { %295 = vadd.xlane.f32.xlu0 %v294_v24 }
  0xdf   :  { %v296_v25 = vpop.xlane.xlu0 %295 }
  0xe0   :  { %v297_v26 = vrot.slane %v296_v25, 4 }
  0xe2   :  { %v298_v27 = vadd.f32 %v297_v26, %v296_v25 }
  0xe4   :  { %v299_v28 = vrot.slane %v298_v27, 2 }
  0xe6   :  { %v300_v29 = vadd.f32 %v299_v28, %v298_v27 }
  0xe8   :  { %v301_v30 = vrot.slane %v300_v29, 1 }
  0xea   :  { %v302_v31 = vadd.f32 %v301_v30, %v300_v29 }
  0xec   :  { %337 = vpush %v302_v31 }
 0x11d   :  { %s338_s0 = spop %337 }
 0x11e   :  { %305 = sst [smem:[#allocation8]] %s338_s0 }
 0x11f   :  { %313 = dma.smem_to_hbm %s422_s1, 16, %s449_s2, [#allocation5]  }
 0x120   :  { %416 = dma.done.wait [#allocation5], 16  }
 0x121   :  { %417 = vsyncadd [#allocation5], 4294967280 }
 0x122   :  { %317 = sfence }
 0x123   :  { %318 = vsyncpa [#allocation4], 1 }
 0x124   :  { %319 = vsyncpa [#allocation7], 1 }
 0x125   :  { %320 = vsyncpa [#allocation5], 1 }

</bundles_post_ra>
